<compile_context>
chip_gen: v5e
topology: v5e:2x2
jax: 0.10.0
libtpu: 0.0.40
codegen_flags: <defaults>
</compile_context>

<pallas_src>
import math

import jax
import jax.numpy as jnp
from jax.experimental import pallas as pl
from jax.experimental.pallas import tpu as pltpu


def _add_kernel(x_ref, y_ref, o_ref):
    # x_ref: (tile_rows, lanes), y_ref: (1, lanes) — row-broadcast VPU add.
    o_ref[...] = x_ref[...] + y_ref[...]


def _round_up(v, m):
    return (v + m - 1) // m * m


def _per_buffer_target_bytes():
    """Per-tile x footprint target, scaled to the TPU generation."""
    try:
        vmem = pltpu.get_tpu_info().vmem_capacity_bytes
    except Exception:  # info not queryable (e.g. interpret mode) -> be safe
        vmem = 64 << 20
    if vmem <= (64 << 20):
        # v7x: fastest HBM (~3.2 TB/s/TC) -> biggest tiles, but only 64 MiB VMEM.
        return 6 << 20
    # v5e / v6e (128 MiB physical VMEM).
    return 4 << 20


def add_constant(x, y):
    """Pallas TPU implementation of `x + y`, y broadcast over x's batch dim."""
    assert x.shape[1:] == y.shape, "y must match x's non-batch dims"
    N = x.shape[0]
    M = math.prod(y.shape)
    y = y.astype(x.dtype)
    itemsize = jnp.dtype(x.dtype).itemsize

    # ---- layout plumbing (wrapper side) ------------------------------------
    # Flatten to a lane-dense 2D view; optionally fold f samples per row so the
    # lane axis is a multiple of 128 (fully unmasked vector loads/stores).
    f = math.lcm(M, 128) // M
    if f > 1 and N % f == 0:
        rows, lanes = N // f, M * f
        x2 = x.reshape(rows, lanes)
        y2 = jnp.tile(y.reshape(-1), f).reshape(1, lanes)  # tiny constant
    else:
        f, rows, lanes = 1, N, M
        x2 = x.reshape(rows, lanes)
        y2 = y.reshape(1, lanes)
    row_bytes = lanes * itemsize

    # ---- tile selection -----------------------------------------------------
    # Several MiB of x per step (DMA-bound regime, >> 0.35 us step cost); for
    # large problems cap the tile so the parallel grid keeps >= ~4 steps.
    target_rows = max(8, (_per_buffer_target_bytes() // row_bytes) // 8 * 8)
    if rows <= 32:
        tile_rows = rows  # single block; full-extent dim is always legal
    else:
        tile_rows = min(target_rows, _round_up(pl.cdiv(rows, 4), 8))
    grid = (pl.cdiv(rows, tile_rows),)

    x_spec = pl.BlockSpec((tile_rows, lanes), lambda i: (i, 0))
    y_spec = pl.BlockSpec((1, lanes), lambda i: (0, 0))

    # x + out double-buffered, plus the tiny y tile (also double-buffered).
    footprint = 4 * tile_rows * row_bytes + 2 * row_bytes
    vmem_limit = int(min(48 << 20, max(footprint + (2 << 20), 16 << 20)))

    out2 = pl.pallas_call(
        _add_kernel,
        out_shape=jax.ShapeDtypeStruct((rows, lanes), x.dtype),
        grid=grid,
        in_specs=[x_spec, y_spec],
        out_specs=x_spec,
        compiler_params=pltpu.CompilerParams(
            dimension_semantics=("parallel",),
            vmem_limit_bytes=vmem_limit,
        ),
        cost_estimate=pl.CostEstimate(
            flops=N * M,
            transcendentals=0,
            bytes_accessed=(2 * N * M + M) * itemsize,
        ),
    )(x2, y2)

    return out2.reshape(x.shape)


if __name__ == "__main__":
    key = jax.random.PRNGKey(0)
    # Module registers y = ones((3, 10, 10)); small batch of 2 for x.
    y = jnp.ones((3, 10, 10), dtype=jnp.float32)

    x = jax.random.normal(key, (2, 3, 10, 10), dtype=jnp.float32)
    out = add_constant(x, y)
    jax.block_until_ready(out)
    assert out.shape == x.shape and out.dtype == x.dtype
    assert bool(jnp.allclose(out, x + y))

    # Also exercise the folded (9600-lane) path with a batch that's a
    # multiple of 32, still small.
    x64 = jax.random.normal(jax.random.PRNGKey(1), (64, 3, 10, 10),
                            dtype=jnp.float32)
    out64 = add_constant(x64, y)
    jax.block_until_ready(out64)
    assert bool(jnp.allclose(out64, x64 + y))

    print("KERNEL_OK")
</pallas_src>

<mosaic_0001>
module attributes {stable_mosaic.version = 11 : i64} {
  func.func @_add_kernel(%arg0: i32, %arg1: memref<2x300xf32, #tpu.memory_space<vmem>>, %arg2: memref<1x300xf32, #tpu.memory_space<vmem>>, %arg3: memref<2x300xf32, #tpu.memory_space<vmem>>) attributes {dimension_semantics = [#tpu.dimension_semantics<parallel>], iteration_bounds = array<i64: 1>, scalar_prefetch = 0 : i64, scratch_operands = 0 : i64, tpu.core_type = #tpu.core_type<tc>, window_params = [{transform_indices = @transform_0, window_bounds = array<i64: 2, 300>}, {pipeline_mode = #tpu.pipeline_mode<synchronous>, transform_indices = @transform_1, window_bounds = array<i64: 1, 300>}, {transform_indices = @transform_2, window_bounds = array<i64: 2, 300>}]} {
    %c0 = arith.constant 0 : index
    %c0_0 = arith.constant 0 : index
    %0 = vector.load %arg1[%c0, %c0_0] : memref<2x300xf32, #tpu.memory_space<vmem>>, vector<2x300xf32>
    %c0_1 = arith.constant 0 : index
    %c0_2 = arith.constant 0 : index
    %1 = vector.load %arg2[%c0_1, %c0_2] : memref<1x300xf32, #tpu.memory_space<vmem>>, vector<1x300xf32>
    %2 = vector.broadcast %1 : vector<1x300xf32> to vector<2x300xf32>
    %3 = arith.addf %0, %2 : vector<2x300xf32>
    %c0_3 = arith.constant 0 : index
    %c0_4 = arith.constant 0 : index
    %4 = vector.load %arg3[%c0_3, %c0_4] : memref<2x300xf32, #tpu.memory_space<vmem>>, vector<2x300xf32>
    tpu.vector_store %arg3[%c0_3, %c0_4], %3 {strides = array<i32>} : memref<2x300xf32, #tpu.memory_space<vmem>>, vector<2x300xf32>,
    return
  }
  func.func @transform_0(%arg0: i32) -> (i32, i32) {
    %c0_i32 = arith.constant 0 : i32
    %c0_i32_0 = arith.constant 0 : i32
    return %arg0, %c0_i32 : i32, i32
  }
  func.func @transform_1(%arg0: i32) -> (i32, i32) {
    %c0_i32 = arith.constant 0 : i32
    %c0_i32_0 = arith.constant 0 : i32
    %c0_i32_1 = arith.constant 0 : i32
    return %c0_i32, %c0_i32_0 : i32, i32
  }
  func.func @transform_2(%arg0: i32) -> (i32, i32) {
    %c0_i32 = arith.constant 0 : i32
    %c0_i32_0 = arith.constant 0 : i32
    return %arg0, %c0_i32 : i32, i32
  }
}

</mosaic_0001>

<bundles_post_ra>
// kernel: tpu_custom_call.1
= control target key start
LH: loop header
LB: loop body
LE: loop exit
PB: predicated region body
PF: predicated region fallthrough
CT: control target
= control target key end

     0   :  { %7 = vsyncpa [#allocation3], 0  ;;  %s185_s0 = inlined_call_operand.hbm [shape: f32[2,300], index: 0, kind: input, shape index: {}]   ;;  %s186_s1 = inlined_call_operand.hbm [shape: f32[1,300], index: 1, kind: input, shape index: {}]   ;;  %s187_s2 = inlined_call_operand.hbm [shape: f32[2,300], index: 2, kind: output, shape index: {}]  }
   0x1   :  { %8 = vsyncpa [#allocation6], 0 }
   0x2   :  { %9 = vsyncpa [#allocation4], 0  ;;  %s15_s11 = sshll.u32 %s185_s0, 4  ;;  %s158_s12 = smov [#allocation2]   ;;  %s16_s11 = int_to_ptr.hbm [resolvable:$true] %s15_s11 }
   0x3   :  { %s17_s13 = sshll.u32 %s158_s12, 4  ;;  %s26_s16 = sshll.u32 %s186_s1, 4  ;;  %s18_s13 = int_to_ptr.vmem [resolvable:$true] %s17_s13  ;;  %s27_s16 = int_to_ptr.hbm [resolvable:$true] %s26_s16 }
   0x4   :  { %20 = dma.hbm_to_vmem [thread:$0]  %s16_s11, 96, %s18_s13, [#allocation3]  }
   0x5   :  { %s159_s17 = smov [#allocation5]  }
   0x6   :  { %s28_s18 = sshll.u32 %s159_s17, 4  ;;  %s29_s18 = int_to_ptr.vmem [resolvable:$true] %s28_s18 }
   0x7   :  { %31 = dma.hbm_to_vmem [thread:$0]  %s27_s16, 48, %s29_s18, [#allocation6]  }
   0x8   :  { %152 = dma.done.wait [#allocation3], 96  }
   0x9   :  { %153 = vsyncadd [#allocation3], 4294967200 }
   0xa   :  { %154 = dma.done.wait [#allocation6], 48  }
   0xb   :  { %155 = vsyncadd [#allocation6], 4294967248  ;;  %v41_v0 = vld [vmem:[#allocation5] sm:$0x7]  ;;  %vm54_vm0 = vcmask 1043458   ;;  %vm48_vm1 = vcmask 1041408  }
   0xc   :  { %v43_v1 = vperm.slane %v41_v0, 0  ;;  %v44_v2 = vperm.slane %v41_v0, 1  ;;  %v45_v3 = vperm.slane %v41_v0, 2  ;;  %vm50_vm2 = vcmask 1043456   ;;  %vm55_vm3 = vmor %vm54_vm0, %vm48_vm1  ;;  %v40_v6 = vld [vmem:[#allocation2] sm:$0x3f] }
   0xd   :  { %vm56_vm4 = vcmask 357380   ;;  %s160_s0 = smov [#allocation7]   ;;  %s66_s21 = sshll.u32 %s187_s2, 4  ;;  %s67_s21 = int_to_ptr.hbm [resolvable:$true] %s66_s21 }
   0xe   :  { %v46_v4 = vrot.slane %v44_v2, 6  ;;  %v47_v5 = vrot.slane %v45_v3, 4  ;;  %s64_s1 = sshll.u32 %s160_s0, 4  ;;  %vm57_vm5 = vmor %vm56_vm4, %vm55_vm3  ;;  %s65_s1 = int_to_ptr.vmem [resolvable:$true] %s64_s1 }
  0x10   :  { %v49_v7 = vsel %vm48_vm1, %v43_v1, %v46_v4 }
  0x11   :  { %v51_v8 = vsel %vm50_vm2, %v49_v7, %v47_v5 }
  0x12   :  { %v53_v9 = vadd.f32 %v51_v8, %v40_v6 }
  0x14   :  { %58 = vst.msk [vmem:[#allocation7] sm:$0x3f] %vm57_vm5, %v53_v9 }
  0x15   :  { %69 = dma.vmem_to_hbm [thread:$0]  %s65_s1, 96, %s67_s21, [#allocation4]  }
  0x16   :  { %156 = dma.done.wait [#allocation4], 96  }
  0x17   :  { %157 = vsyncadd [#allocation4], 4294967200 }
  0x18   :  { %74 = vsyncpa [#allocation3], 1 }
  0x19   :  { %75 = vsyncpa [#allocation6], 1 }
  0x1a   :  { %76 = vsyncpa [#allocation4], 1 }

</bundles_post_ra>
